<compile_context>
chip_gen: v7x
topology: tpu7x:2x2x1
jax: 0.10.0
libtpu: 0.0.40
codegen_flags: <defaults>
</compile_context>

<pallas_src>
import functools

import jax
import jax.numpy as jnp
from jax.experimental import pallas as pl
from jax.experimental.pallas import tpu as pltpu

# ERCConfig.classifier_epsilon — deterministic synthetic value (no checkpoint).
CLASSIFIER_EPSILON = 1e-8


def _round_up(x, m):
    return ((x + m - 1) // m) * m


def _dice_partial_sums_kernel(yp_ref, yt_ref, tp_ref, sm_ref):
    """Streams lane-packed (tb, W) tiles, accumulating per-lane sums of
    y_pred*y_true and y_pred+y_true into per-core resident output blocks."""
    i = pl.program_id(1)  # inner (reduction) axis within this core's slice

    @pl.when(i == 0)
    def _init():
        tp_ref[...] = jnp.zeros_like(tp_ref)
        sm_ref[...] = jnp.zeros_like(sm_ref)

    # f32 math regardless of input dtype (v5e has no bf16 VPU/EUP support).
    yp = yp_ref[...].astype(jnp.float32)  # (tb, W)
    yt = yt_ref[...].astype(jnp.float32)  # (tb, W)

    # 2*TP + FP + FN == sum(y_pred) + sum(y_true): two reductions per tile.
    tp_ref[...] += jnp.sum(yp * yt, axis=0)[None, None, :]
    sm_ref[...] += jnp.sum(yp + yt, axis=0)[None, None, :]


@functools.partial(jax.jit, static_argnames=("block_rows",))
def dice_coefficient_loss(y_pred, y_true, *, block_rows=4096):
    """Dice-coefficient loss over (B, C) probability / one-hot label arrays."""
    assert y_pred.ndim == 2 and y_pred.shape == y_true.shape
    b, c = y_pred.shape

    # --- Lane packing of the class dimension -------------------------------
    # Pad C to a power of two that divides 128 (or a multiple of 128 for wide
    # C) and fold g batch rows into one W-lane packed row.
    if c < 128:
        c_pad = pl.next_power_of_2(c)
        g = 128 // c_pad
        w = 128
    else:
        c_pad = _round_up(c, 128)
        g = 1
        w = c_pad

    # Dtype-aware sublane multiple (f32 -> 8, bf16 -> 16, int8/fp8 -> 32).
    isz_p = jnp.dtype(y_pred.dtype).itemsize
    isz_t = jnp.dtype(y_true.dtype).itemsize
    sub = max(8 * (4 // max(isz_p, 1)), 8 * (4 // max(isz_t, 1)), 8)
    itemsize = max(isz_p, isz_t)

    # --- Tile sizing --------------------------------------------------------
    rows = pl.cdiv(b, g)  # packed rows actually carrying data
    # 2 inputs x 2 pipeline buffers x tb x W x itemsize stays under ~12 MiB,
    # comfortably inside v5e's 16 MiB scoped-VMEM default (v6e/v7x: 32 MiB).
    vmem_cap_rows = max(sub, ((3 << 20) // (w * itemsize)) // sub * sub)
    tb = min(_round_up(rows, sub), _round_up(block_rows, sub), vmem_cap_rows)

    n_blocks = pl.cdiv(rows, tb)
    n_cores = 2 if n_blocks >= 2 else 1      # v7x: 2 TCs; harmless on v5e/v6e
    npc = pl.cdiv(n_blocks, n_cores)         # inner blocks per core
    rows_pad = n_cores * npc * tb
    b_pad = rows_pad * g

    # One fused pad+reshape per input; zero rows/classes add exactly 0 to both
    # accumulated sums, so padding does not change the result.
    # TODO(synk): keep the (rows, W) lane-packed layout upstream to avoid this
    # extra HBM pass entirely.
    yp = jnp.pad(y_pred, ((0, b_pad - b), (0, c_pad - c))).reshape(rows_pad, w)
    yt = jnp.pad(y_true, ((0, b_pad - b), (0, c_pad - c))).reshape(rows_pad, w)

    in_map = lambda cc, i: (cc * npc + i, 0)
    out_map = lambda cc, i: (cc, 0, 0)       # per-core resident accumulator

    tp_part, sm_part = pl.pallas_call(
        _dice_partial_sums_kernel,
        out_shape=(
            jax.ShapeDtypeStruct((n_cores, 1, w), jnp.float32),
            jax.ShapeDtypeStruct((n_cores, 1, w), jnp.float32),
        ),
        grid_spec=pltpu.PrefetchScalarGridSpec(
            num_scalar_prefetch=0,
            grid=(n_cores, npc),
            in_specs=[
                pl.BlockSpec((tb, w), in_map),
                pl.BlockSpec((tb, w), in_map),
            ],
            out_specs=(
                pl.BlockSpec((1, 1, w), out_map),
                pl.BlockSpec((1, 1, w), out_map),
            ),
        ),
        compiler_params=pltpu.CompilerParams(
            # Leading axis splits the batch across TensorCores (v7x megacore);
            # inner axis is a sequential reduction into the resident output.
            dimension_semantics=("parallel", "arbitrary"),
        ),
    )(yp, yt)

    # Tiny finalize in plain JAX: combine cores, fold the g lane-groups back
    # into per-class sums, drop pad classes, compute dice and its mean.
    tp = tp_part.sum(axis=(0, 1)).reshape(g, c_pad).sum(axis=0)[:c]
    sm = sm_part.sum(axis=(0, 1)).reshape(g, c_pad).sum(axis=0)[:c]
    dice = (2.0 * tp) / (sm + CLASSIFIER_EPSILON)
    return 1.0 - jnp.mean(dice)


def _reference(y_pred, y_true, eps=CLASSIFIER_EPSILON):
    """Pure-JAX transcription of the original PyTorch forward."""
    y_pred = y_pred.astype(jnp.float32)
    y_true = y_true.astype(jnp.float32)
    tp = jnp.sum(y_pred * y_true, axis=0)
    fp = jnp.sum(y_pred * (1.0 - y_true), axis=0)
    fn = jnp.sum((1.0 - y_pred) * y_true, axis=0)
    dice = 2.0 * tp / (2.0 * tp + fp + fn + eps)
    return 1.0 - jnp.mean(dice)


if __name__ == "__main__":
    key = jax.random.PRNGKey(0)
    k1, k2, k3, k4 = jax.random.split(key, 4)

    # Small ERC-style shapes: batch of 8 utterances, 7 emotion classes.
    B, C = 8, 7
    y_pred = jax.nn.softmax(jax.random.normal(k1, (B, C), dtype=jnp.float32), axis=-1)
    y_true = jax.nn.one_hot(jax.random.randint(k2, (B,), 0, C), C, dtype=jnp.float32)

    loss = dice_coefficient_loss(y_pred, y_true)
    jax.block_until_ready(loss)
    ref = _reference(y_pred, y_true)
    assert jnp.allclose(loss, ref, atol=1e-5, rtol=1e-5), (loss, ref)

    # Larger batch with a tiny block override exercises the multi-block,
    # two-core-split accumulation path (grid = (2, 2)).
    B2 = 500
    y_pred2 = jax.nn.softmax(jax.random.normal(k3, (B2, C), dtype=jnp.float32), axis=-1)
    y_true2 = jax.nn.one_hot(jax.random.randint(k4, (B2,), 0, C), C, dtype=jnp.float32)
    loss2 = dice_coefficient_loss(y_pred2, y_true2, block_rows=8)
    jax.block_until_ready(loss2)
    ref2 = _reference(y_pred2, y_true2)
    assert jnp.allclose(loss2, ref2, atol=1e-5, rtol=1e-5), (loss2, ref2)

    # bf16 inputs exercise the dtype-aware 16-row sublane rounding.
    loss3 = dice_coefficient_loss(
        y_pred2.astype(jnp.bfloat16), y_true2.astype(jnp.bfloat16), block_rows=8
    )
    jax.block_until_ready(loss3)
    ref3 = _reference(y_pred2.astype(jnp.bfloat16), y_true2.astype(jnp.bfloat16))
    assert jnp.allclose(loss3, ref3, atol=1e-4, rtol=1e-4), (loss3, ref3)

    print("KERNEL_OK")
</pallas_src>

<mosaic_0001>
module attributes {stable_mosaic.version = 11 : i64} {
  func.func @_dice_partial_sums_kernel(%arg0: i32, %arg1: i32, %arg2: memref<8x128xf32, #tpu.memory_space<vmem>>, %arg3: memref<8x128xf32, #tpu.memory_space<vmem>>, %arg4: memref<1x1x128xf32, #tpu.memory_space<vmem>>, %arg5: memref<1x1x128xf32, #tpu.memory_space<vmem>>) attributes {dimension_semantics = [#tpu.dimension_semantics<parallel>, #tpu.dimension_semantics<arbitrary>], iteration_bounds = array<i64: 1, 1>, scalar_prefetch = 0 : i64, scratch_operands = 0 : i64, tpu.core_type = #tpu.core_type<tc>, window_params = [{transform_indices = @transform_0, window_bounds = array<i64: 8, 128>}, {transform_indices = @transform_1, window_bounds = array<i64: 8, 128>}, {transform_indices = @transform_2, window_bounds = array<i64: 1, 1, 128>}, {transform_indices = @transform_3, window_bounds = array<i64: 1, 1, 128>}]} {
    %c0_i32 = arith.constant 0 : i32
    %0 = arith.cmpi eq, %arg1, %c0_i32 : i32
    %1 = arith.extui %0 : i1 to i32
    %c0_i32_0 = arith.constant 0 : i32
    %2 = arith.cmpi ne, %1, %c0_i32_0 : i32
    scf.if %2 {
      %cst_17 = arith.constant 0.000000e+00 : f32
      %17 = vector.broadcast %cst_17 : f32 to vector<1x1x128xf32>
      %c0_18 = arith.constant 0 : index
      %c0_19 = arith.constant 0 : index
      %c0_20 = arith.constant 0 : index
      %18 = vector.load %arg4[%c0_18, %c0_19, %c0_20] : memref<1x1x128xf32, #tpu.memory_space<vmem>>, vector<1x1x128xf32>
      tpu.vector_store %arg4[%c0_18, %c0_19, %c0_20], %17 {strides = array<i32>} : memref<1x1x128xf32, #tpu.memory_space<vmem>>, vector<1x1x128xf32>,
      %cst_21 = arith.constant 0.000000e+00 : f32
      %19 = vector.broadcast %cst_21 : f32 to vector<1x1x128xf32>
      %c0_22 = arith.constant 0 : index
      %c0_23 = arith.constant 0 : index
      %c0_24 = arith.constant 0 : index
      %20 = vector.load %arg5[%c0_22, %c0_23, %c0_24] : memref<1x1x128xf32, #tpu.memory_space<vmem>>, vector<1x1x128xf32>
      tpu.vector_store %arg5[%c0_22, %c0_23, %c0_24], %19 {strides = array<i32>} : memref<1x1x128xf32, #tpu.memory_space<vmem>>, vector<1x1x128xf32>,
    } else {
    }
    %c0 = arith.constant 0 : index
    %c0_1 = arith.constant 0 : index
    %3 = vector.load %arg2[%c0, %c0_1] : memref<8x128xf32, #tpu.memory_space<vmem>>, vector<8x128xf32>
    %c0_2 = arith.constant 0 : index
    %c0_3 = arith.constant 0 : index
    %4 = vector.load %arg3[%c0_2, %c0_3] : memref<8x128xf32, #tpu.memory_space<vmem>>, vector<8x128xf32>
    %c0_4 = arith.constant 0 : index
    %c0_5 = arith.constant 0 : index
    %c0_6 = arith.constant 0 : index
    %5 = vector.load %arg4[%c0_4, %c0_5, %c0_6] : memref<1x1x128xf32, #tpu.memory_space<vmem>>, vector<1x1x128xf32>
    %6 = arith.mulf %3, %4 : vector<8x128xf32>
    %cst = arith.constant dense<0.000000e+00> : vector<128xf32>
    %7 = vector.multi_reduction <add>, %6, %cst [0] : vector<8x128xf32> to vector<128xf32>
    %8 = vector.shape_cast %7 : vector<128xf32> to vector<1x1x128xf32>
    %9 = arith.addf %5, %8 : vector<1x1x128xf32>
    %c0_7 = arith.constant 0 : index
    %c0_8 = arith.constant 0 : index
    %c0_9 = arith.constant 0 : index
    %10 = vector.load %arg4[%c0_7, %c0_8, %c0_9] : memref<1x1x128xf32, #tpu.memory_space<vmem>>, vector<1x1x128xf32>
    tpu.vector_store %arg4[%c0_7, %c0_8, %c0_9], %9 {strides = array<i32>} : memref<1x1x128xf32, #tpu.memory_space<vmem>>, vector<1x1x128xf32>,
    %c0_10 = arith.constant 0 : index
    %c0_11 = arith.constant 0 : index
    %c0_12 = arith.constant 0 : index
    %11 = vector.load %arg5[%c0_10, %c0_11, %c0_12] : memref<1x1x128xf32, #tpu.memory_space<vmem>>, vector<1x1x128xf32>
    %12 = arith.addf %3, %4 : vector<8x128xf32>
    %cst_13 = arith.constant dense<0.000000e+00> : vector<128xf32>
    %13 = vector.multi_reduction <add>, %12, %cst_13 [0] : vector<8x128xf32> to vector<128xf32>
    %14 = vector.shape_cast %13 : vector<128xf32> to vector<1x1x128xf32>
    %15 = arith.addf %11, %14 : vector<1x1x128xf32>
    %c0_14 = arith.constant 0 : index
    %c0_15 = arith.constant 0 : index
    %c0_16 = arith.constant 0 : index
    %16 = vector.load %arg5[%c0_14, %c0_15, %c0_16] : memref<1x1x128xf32, #tpu.memory_space<vmem>>, vector<1x1x128xf32>
    tpu.vector_store %arg5[%c0_14, %c0_15, %c0_16], %15 {strides = array<i32>} : memref<1x1x128xf32, #tpu.memory_space<vmem>>, vector<1x1x128xf32>,
    return
  }
  func.func @transform_0(%arg0: i32, %arg1: i32) -> (i32, i32) {
    %c1_i32 = arith.constant 1 : i32
    %0 = arith.muli %arg0, %c1_i32 : i32
    %1 = arith.addi %0, %arg1 : i32
    %c0_i32 = arith.constant 0 : i32
    %c0_i32_0 = arith.constant 0 : i32
    return %1, %c0_i32 : i32, i32
  }
  func.func @transform_1(%arg0: i32, %arg1: i32) -> (i32, i32) {
    %c1_i32 = arith.constant 1 : i32
    %0 = arith.muli %arg0, %c1_i32 : i32
    %1 = arith.addi %0, %arg1 : i32
    %c0_i32 = arith.constant 0 : i32
    %c0_i32_0 = arith.constant 0 : i32
    return %1, %c0_i32 : i32, i32
  }
  func.func @transform_2(%arg0: i32, %arg1: i32) -> (i32, i32, i32) {
    %c0_i32 = arith.constant 0 : i32
    %c0_i32_0 = arith.constant 0 : i32
    %c0_i32_1 = arith.constant 0 : i32
    return %arg0, %c0_i32, %c0_i32_0 : i32, i32, i32
  }
  func.func @transform_3(%arg0: i32, %arg1: i32) -> (i32, i32, i32) {
    %c0_i32 = arith.constant 0 : i32
    %c0_i32_0 = arith.constant 0 : i32
    %c0_i32_1 = arith.constant 0 : i32
    return %arg0, %c0_i32, %c0_i32_0 : i32, i32, i32
  }
}

</mosaic_0001>

<bundles_post_ra>
// kernel: dice_coefficient_loss.1
= control target key start
LH: loop header
LB: loop body
LE: loop exit
PB: predicated region body
PF: predicated region fallthrough
CT: control target
= control target key end

     0   :  { %v96_v0 = vmov 0.0   ;;  %s141_s2 = inlined_call_operand.vmem [shape: f32[1,1,128], index: 2, kind: output, shape index: {0}]   ;;  %s142_s3 = inlined_call_operand.vmem [shape: f32[1,1,128], index: 3, kind: output, shape index: {1}]   ;;  %s143_s0 = inlined_call_operand.vmem [shape: f32[8,128], index: 0, kind: input, shape index: {}]   ;;  %s144_s1 = inlined_call_operand.vmem [shape: f32[8,128], index: 1, kind: input, shape index: {}]  }
   0x1   :  { %51 = vst [vmem:[%s141_s2] sm:$0x1] %v96_v0  ;;  %52 = vst [vmem:[%s142_s3] sm:$0x1] %v96_v0  ;;  %v53_v1 = vld [vmem:[%s143_s0] sm:$0xff] }
   0x2   :  { %v54_v2 = vld [vmem:[%s144_s1] sm:$0xff] }
   0x3   :  { %v56_v3 = vmul.f32 %v54_v2, %v53_v1  ;;  %v66_v4 = vadd.f32 %v54_v2, %v53_v1 }
   0x5   :  { %v57_v5 = vrot.slane %v56_v3, 4  ;;  %v67_v6 = vrot.slane %v66_v4, 4 }
   0x7   :  { %v58_v7 = vadd.f32 %v57_v5, %v56_v3  ;;  %v68_v8 = vadd.f32 %v67_v6, %v66_v4 }
   0x8   :  { %v55_v15 = vld [vmem:[%s141_s2] sm:$0x1] }
   0x9   :  { %v59_v9 = vrot.slane %v58_v7, 2  ;;  %v69_v10 = vrot.slane %v68_v8, 2  ;;  %v65_v16 = vld [vmem:[%s142_s3] sm:$0x1] }
   0xb   :  { %v60_v11 = vadd.f32 %v59_v9, %v58_v7  ;;  %v70_v12 = vadd.f32 %v69_v10, %v68_v8 }
   0xd   :  { %v61_v13 = vrot.slane %v60_v11, 1  ;;  %v71_v14 = vrot.slane %v70_v12, 1 }
   0xf   :  { %v62_v17 = vadd.f32 %v61_v13, %v60_v11  ;;  %v72_v18 = vadd.f32 %v71_v14, %v70_v12 }
  0x11   :  { %v63_v19 = vadd.f32 %v62_v17, %v55_v15  ;;  %v73_v20 = vadd.f32 %v72_v18, %v65_v16 }
  0x13   :  { %64 = vst [vmem:[%s141_s2] sm:$0x1] %v63_v19  ;;  %74 = vst [vmem:[%s142_s3] sm:$0x1] %v73_v20 }

</bundles_post_ra>
